<compile_context>
chip_gen: v5e
topology: v5e:2x2
jax: 0.10.0
libtpu: 0.0.40
codegen_flags: <defaults>
</compile_context>

<pallas_src>
import jax
import jax.numpy as jnp
from jax.experimental import pallas as pl
from jax.experimental.pallas import tpu as pltpu

_TM_CAP = 512      # output sublane tile cap
_TN_CAP = 512      # output lane tile cap
_TK_CAP = 1024     # reduction tile cap


def _round_up(x, m):
    return ((x + m - 1) // m) * m


def _kernel_direct_f32(x_ref, w_ref, b_ref, o_ref):
    """f32 output: accumulate straight into the resident output block."""
    k = pl.program_id(3)

    @pl.when(k == 0)
    def _():
        o_ref[...] = jnp.zeros_like(o_ref)

    # x_ref: (1, tm, tk), w_ref: (1, tk, tn) — standard MXU contraction.
    o_ref[0] += jnp.dot(x_ref[0], w_ref[0], preferred_element_type=jnp.float32)

    @pl.when(k == pl.num_programs(3) - 1)
    def _():
        o_ref[0] += b_ref[0]


def _kernel_scratch(x_ref, w_ref, b_ref, o_ref, acc_ref):
    """Non-f32 output: accumulate in an f32 VMEM scratch, cast on last K step."""
    k = pl.program_id(3)

    @pl.when(k == 0)
    def _():
        acc_ref[...] = jnp.zeros_like(acc_ref)

    acc_ref[...] += jnp.dot(x_ref[0], w_ref[0], preferred_element_type=jnp.float32)

    @pl.when(k == pl.num_programs(3) - 1)
    def _():
        o_ref[0] = (acc_ref[...] + b_ref[0].astype(jnp.float32)).astype(o_ref.dtype)


@jax.jit
def batch_linear(x, weights, biases):
    """out[b] = x[b] @ weights[b].T + biases[b]

    x:       (batch, M, in_ch)
    weights: (batch, out_ch, in_ch)   -- PyTorch BatchLinear convention
    biases:  (batch, 1, out_ch)
    returns  (batch, M, out_ch) in x.dtype
    """
    B, M, K = x.shape
    Bw, N, Kw = weights.shape
    assert Kw == K and Bw == B and biases.shape == (B, 1, N)
    out_dtype = x.dtype

    # One-time relayout to the MXU-native RHS layout (B, K, N).
    w_kn = jnp.swapaxes(weights, 1, 2)

    # Tile sizes.  Dims at or below the cap use one full-dim block (the (8,128)
    # escape hatch) -> no pad, no output slice for the common/aligned case.
    tm = M if M <= _TM_CAP else _TM_CAP
    tn = N if N <= _TN_CAP else _TN_CAP
    tk = K if K <= _TK_CAP else _TK_CAP

    Mp, Np, Kp = _round_up(M, tm), _round_up(N, tn), _round_up(K, tk)

    xp = x if (Mp == M and Kp == K) else jnp.pad(x, ((0, 0), (0, Mp - M), (0, Kp - K)))
    wp = w_kn if (Kp == K and Np == N) else jnp.pad(w_kn, ((0, 0), (0, Kp - K), (0, Np - N)))
    bp = biases if Np == N else jnp.pad(biases, ((0, 0), (0, 0), (0, Np - N)))

    n_i, n_j, n_k = Mp // tm, Np // tn, Kp // tk
    grid = (B, n_i, n_j, n_k)

    in_itemsize = jnp.dtype(x.dtype).itemsize
    out_itemsize = jnp.dtype(out_dtype).itemsize

    # Truthful HBM traffic: x re-streamed per N tile, weights/bias per M tile.
    cost = pl.CostEstimate(
        flops=2 * B * Mp * Np * Kp,
        transcendentals=0,
        bytes_accessed=(
            in_itemsize * (B * Mp * Kp * n_j + B * Kp * Np * n_i + B * Np * n_i)
            + out_itemsize * B * Mp * Np
        ),
    )

    use_scratch = out_dtype != jnp.float32
    kernel = _kernel_scratch if use_scratch else _kernel_direct_f32
    scratch_shapes = [pltpu.VMEM((tm, tn), jnp.float32)] if use_scratch else []

    # Double-buffered footprint (+ scratch); keep well under v7x's 64 MiB while
    # not silently falling back to the small scoped default on v5e.
    tile_bytes = 2 * in_itemsize * (tm * tk + tk * tn + tn) + 2 * out_itemsize * tm * tn
    if use_scratch:
        tile_bytes += 4 * tm * tn
    vmem_limit = int(min(48 * 1024 * 1024, max(32 * 1024 * 1024, 2 * tile_bytes)))

    out = pl.pallas_call(
        kernel,
        out_shape=jax.ShapeDtypeStruct((B, Mp, Np), out_dtype),
        grid_spec=pltpu.PrefetchScalarGridSpec(
            num_scalar_prefetch=0,
            grid=grid,
            in_specs=[
                pl.BlockSpec((1, tm, tk), lambda b, i, j, k: (b, i, k)),
                pl.BlockSpec((1, tk, tn), lambda b, i, j, k: (b, k, j)),
                pl.BlockSpec((1, 1, tn), lambda b, i, j, k: (b, 0, j)),
            ],
            out_specs=pl.BlockSpec((1, tm, tn), lambda b, i, j, k: (b, i, j)),
            scratch_shapes=scratch_shapes,
        ),
        compiler_params=pltpu.CompilerParams(
            dimension_semantics=("parallel", "parallel", "parallel", "arbitrary"),
            vmem_limit_bytes=vmem_limit,
        ),
        cost_estimate=cost,
    )(xp, wp, bp)

    if Mp != M or Np != N:
        out = out[:, :M, :N]
    return out


def _reference(x, weights, biases):
    # input.matmul(weights.permute(..., -1, -2)) + biases
    return jnp.einsum("bmk,bnk->bmn", x, weights) + biases


if __name__ == "__main__":
    # Shapes implied by BatchLinear.forward: x (batch, seq, in_ch),
    # weights (batch, out_ch, in_ch), biases (batch, 1, out_ch).
    batch, seq, in_ch, out_ch = 2, 8, 32, 64

    key = jax.random.PRNGKey(0)
    kx, kw, kb = jax.random.split(key, 3)

    x = jax.random.normal(kx, (batch, seq, in_ch), dtype=jnp.float32)
    bound = 1.0 / jnp.sqrt(in_ch)
    weights = jax.random.uniform(
        kw, (batch, out_ch, in_ch), minval=-bound, maxval=bound, dtype=jnp.float32
    )
    biases = jax.random.uniform(
        kb, (batch, 1, out_ch), minval=-bound, maxval=bound, dtype=jnp.float32
    )

    out = batch_linear(x, weights, biases)
    out = jax.block_until_ready(out)

    ref = _reference(x, weights, biases)
    assert out.shape == (batch, seq, out_ch)
    assert jnp.allclose(out, ref, atol=1e-5, rtol=1e-5), "mismatch vs reference"

    print("KERNEL_OK")
</pallas_src>

<mosaic_0001>
module attributes {stable_mosaic.version = 11 : i64} {
  func.func @_kernel_direct_f32(%arg0: i32, %arg1: i32, %arg2: i32, %arg3: i32, %arg4: memref<1x8x32xf32, #tpu.memory_space<vmem>>, %arg5: memref<1x32x64xf32, #tpu.memory_space<vmem>>, %arg6: memref<1x1x64xf32, #tpu.memory_space<vmem>>, %arg7: memref<1x8x64xf32, #tpu.memory_space<vmem>>) attributes {dimension_semantics = [#tpu.dimension_semantics<parallel>, #tpu.dimension_semantics<parallel>, #tpu.dimension_semantics<parallel>, #tpu.dimension_semantics<arbitrary>], iteration_bounds = array<i64: 2, 1, 1, 1>, scalar_prefetch = 0 : i64, scratch_operands = 0 : i64, tpu.core_type = #tpu.core_type<tc>, window_params = [{transform_indices = @transform_0, window_bounds = array<i64: 1, 8, 32>}, {transform_indices = @transform_1, window_bounds = array<i64: 1, 32, 64>}, {transform_indices = @transform_2, window_bounds = array<i64: 1, 1, 64>}, {transform_indices = @transform_3, window_bounds = array<i64: 1, 8, 64>}]} {
    %c0_i32 = arith.constant 0 : i32
    %0 = arith.cmpi eq, %arg3, %c0_i32 : i32
    %1 = arith.extui %0 : i1 to i32
    %c0_i32_0 = arith.constant 0 : i32
    %2 = arith.cmpi ne, %1, %c0_i32_0 : i32
    scf.if %2 {
      %cst_14 = arith.constant 0.000000e+00 : f32
      %17 = vector.broadcast %cst_14 : f32 to vector<1x8x64xf32>
      %c0_15 = arith.constant 0 : index
      %c0_16 = arith.constant 0 : index
      %c0_17 = arith.constant 0 : index
      %18 = vector.load %arg7[%c0_15, %c0_16, %c0_17] : memref<1x8x64xf32, #tpu.memory_space<vmem>>, vector<1x8x64xf32>
      tpu.vector_store %arg7[%c0_15, %c0_16, %c0_17], %17 {strides = array<i32>} : memref<1x8x64xf32, #tpu.memory_space<vmem>>, vector<1x8x64xf32>,
    } else {
    }
    %c0 = arith.constant 0 : index
    %c0_1 = arith.constant 0 : index
    %c0_2 = arith.constant 0 : index
    %3 = vector.load %arg7[%c0, %c0_1, %c0_2] : memref<1x8x64xf32, #tpu.memory_space<vmem>>, vector<1x8x64xf32>
    %4 = vector.shape_cast %3 : vector<1x8x64xf32> to vector<8x64xf32>
    %c0_3 = arith.constant 0 : index
    %c0_4 = arith.constant 0 : index
    %c0_5 = arith.constant 0 : index
    %5 = vector.load %arg4[%c0_3, %c0_4, %c0_5] : memref<1x8x32xf32, #tpu.memory_space<vmem>>, vector<1x8x32xf32>
    %6 = vector.shape_cast %5 : vector<1x8x32xf32> to vector<8x32xf32>
    %c0_6 = arith.constant 0 : index
    %c0_7 = arith.constant 0 : index
    %c0_8 = arith.constant 0 : index
    %7 = vector.load %arg5[%c0_6, %c0_7, %c0_8] : memref<1x32x64xf32, #tpu.memory_space<vmem>>, vector<1x32x64xf32>
    %8 = vector.shape_cast %7 : vector<1x32x64xf32> to vector<32x64xf32>
    %cst = arith.constant dense<0.000000e+00> : vector<8x64xf32>
    %9 = tpu.matmul %6, %8, %cst {dimension_numbers = #tpu.dot_dimension_numbers<[1], [0], [0], [1], [0, 0, 1, 1], [], []>} : vector<8x32xf32>, vector<32x64xf32>, vector<8x64xf32> -> vector<8x64xf32>
    %10 = arith.addf %4, %9 : vector<8x64xf32>
    %c0_9 = arith.constant 0 : index
    %c0_10 = arith.constant 0 : index
    %c0_11 = arith.constant 0 : index
    %11 = vector.load %arg7[%c0_9, %c0_10, %c0_11] : memref<1x8x64xf32, #tpu.memory_space<vmem>>, vector<1x8x64xf32>
    %12 = vector.shape_cast %11 : vector<1x8x64xf32> to vector<8x64xf32>
    %13 = vector.shape_cast %10 : vector<8x64xf32> to vector<1x8x64xf32>
    tpu.vector_store %arg7[%c0_9, %c0_10, %c0_11], %13 {strides = array<i32>} : memref<1x8x64xf32, #tpu.memory_space<vmem>>, vector<1x8x64xf32>,
    %c0_i32_12 = arith.constant 0 : i32
    %14 = arith.cmpi eq, %arg3, %c0_i32_12 : i32
    %15 = arith.extui %14 : i1 to i32
    %c0_i32_13 = arith.constant 0 : i32
    %16 = arith.cmpi ne, %15, %c0_i32_13 : i32
    scf.if %16 {
      %c0_14 = arith.constant 0 : index
      %c0_15 = arith.constant 0 : index
      %c0_16 = arith.constant 0 : index
      %17 = vector.load %arg7[%c0_14, %c0_15, %c0_16] : memref<1x8x64xf32, #tpu.memory_space<vmem>>, vector<1x8x64xf32>
      %18 = vector.shape_cast %17 : vector<1x8x64xf32> to vector<8x64xf32>
      %c0_17 = arith.constant 0 : index
      %c0_18 = arith.constant 0 : index
      %c0_19 = arith.constant 0 : index
      %19 = vector.load %arg6[%c0_17, %c0_18, %c0_19] : memref<1x1x64xf32, #tpu.memory_space<vmem>>, vector<1x1x64xf32>
      %20 = vector.shape_cast %19 : vector<1x1x64xf32> to vector<1x64xf32>
      %21 = vector.broadcast %20 : vector<1x64xf32> to vector<8x64xf32>
      %22 = arith.addf %18, %21 : vector<8x64xf32>
      %c0_20 = arith.constant 0 : index
      %c0_21 = arith.constant 0 : index
      %c0_22 = arith.constant 0 : index
      %23 = vector.load %arg7[%c0_20, %c0_21, %c0_22] : memref<1x8x64xf32, #tpu.memory_space<vmem>>, vector<1x8x64xf32>
      %24 = vector.shape_cast %23 : vector<1x8x64xf32> to vector<8x64xf32>
      %25 = vector.shape_cast %22 : vector<8x64xf32> to vector<1x8x64xf32>
      tpu.vector_store %arg7[%c0_20, %c0_21, %c0_22], %25 {strides = array<i32>} : memref<1x8x64xf32, #tpu.memory_space<vmem>>, vector<1x8x64xf32>,
    } else {
    }
    return
  }
  func.func @transform_0(%arg0: i32, %arg1: i32, %arg2: i32, %arg3: i32) -> (i32, i32, i32) {
    %c0_i32 = arith.constant 0 : i32
    return %arg0, %arg1, %arg3 : i32, i32, i32
  }
  func.func @transform_1(%arg0: i32, %arg1: i32, %arg2: i32, %arg3: i32) -> (i32, i32, i32) {
    %c0_i32 = arith.constant 0 : i32
    return %arg0, %arg3, %arg2 : i32, i32, i32
  }
  func.func @transform_2(%arg0: i32, %arg1: i32, %arg2: i32, %arg3: i32) -> (i32, i32, i32) {
    %c0_i32 = arith.constant 0 : i32
    %c0_i32_0 = arith.constant 0 : i32
    return %arg0, %c0_i32, %arg2 : i32, i32, i32
  }
  func.func @transform_3(%arg0: i32, %arg1: i32, %arg2: i32, %arg3: i32) -> (i32, i32, i32) {
    %c0_i32 = arith.constant 0 : i32
    return %arg0, %arg1, %arg2 : i32, i32, i32
  }
}

</mosaic_0001>

<bundles_post_ra>
// kernel: batch_linear.1
= control target key start
LH: loop header
LB: loop body
LE: loop exit
PB: predicated region body
PF: predicated region fallthrough
CT: control target
= control target key end

     0   :  { %8 = vsyncpa [#allocation3], 0  ;;  %s914_s0 = inlined_call_operand.hbm [shape: f32[2,8,32], index: 0, kind: input, shape index: {}]   ;;  %s915_s1 = inlined_call_operand.hbm [shape: f32[2,32,64], index: 1, kind: input, shape index: {}]   ;;  %s916_s2 = inlined_call_operand.vmem [shape: f32[2,1,64], index: 2, kind: input, shape index: {}]   ;;  %s917_s3 = inlined_call_operand.hbm [shape: f32[2,8,64], index: 3, kind: output, shape index: {}]  }
   0x1   :  { %10 = vsyncpa [#allocation3 + $0x1], 0 }
   0x2   :  { %11 = vsyncpa [#allocation6], 0 }
   0x3   :  { %13 = vsyncpa [#allocation6 + $0x1], 0 }
   0x4   :  { %14 = vsyncpa [#allocation4], 0 }
   0x5   :  { %16 = vsyncpa [#allocation4 + $0x1], 0  ;;  %s754_s12 = smov 0   ;;  %s756_s13 = smov 0  }
   0x6   :  { %s758_s14 = smov 0   ;;  %s760_s15 = smov 0  }
   0x7   :  { %s762_s16 = smov 0   ;;  %s764_s17 = smov 0  }
   0x8 LB: > { %s493_s18 = sadd.s32 4294967295, %s729_s17   ;;  %s494_s19 = sadd.s32 4294967294, %s729_s17   ;;  %s729_s17 = sphi %s764_s17, %s22_s17   ;;  %s725_s16 = sphi %s762_s16, %s927_s16   ;;  %s721_s15 = sphi %s760_s15, %s926_s15   ;;  %s717_s14 = sphi %s758_s14, %s925_s14   ;;  %s713_s13 = sphi %s756_s13, %s924_s13   ;;  %s709_s12 = sphi %s754_s12, %s923_s12  }
   0x9   : > { %s48_s20 = sadd.s32 1, %s725_s16  ;;  %s59_s21 = sadd.s32 1, %s717_s14 }
   0xa   : > { %p50_p0 = scmp.ge.s32.totalorder %s48_s20, 2  ;;  %p66_p1 = scmp.ne.s32.totalorder %s717_s14, %s713_s13 }
   0xb   : > { %p67_p2 = scmp.eq.s32.totalorder %s729_s17, 0  ;;  %p72_p3 = scmp.ne.s32.totalorder %s713_s13, %s709_s12 }
   0xc   : > { %s929_s20 = smov (%p50_p0, %s48_s20), 0  ;;  %p73_p5 = scmp.eq.s32.totalorder %s493_s18, 0 }
   0xd   : > { %p795_p4 = por %p67_p2, %p66_p1  ;;  %s52_s23 = ssub.s32 %s725_s16, %s929_s20 }
   0xe   : > { %p158_p6 = scmp.eq.s32.totalorder %s493_s18, 1  ;;  %p57_p7 = scmp.eq.s32.totalorder %s52_s23, 0 }
   0xf   : > { %p801_p8 = por %p73_p5, %p72_p3  ;;  %p164_p10 = scmp.eq.s32.totalorder %s494_s19, 1 }
  0x10   : > { %p805_p9 = por %p158_p6, %p66_p1  ;;  %p496_p12 = scmp.ge.s32.totalorder %s729_s17, 2 }
  0x11   : > { %s810_s26 = scalar_select %p57_p7, %s717_s14, %s59_s21  }
  0x12   : > { %p812_p11 = por %p164_p10, %p72_p3  ;;  %p529_p13 = scmp.lt.s32.totalorder %s729_s17, 2 }
  0x13   : > { %s819_s28 = sand.u32 1, %s717_s14   ;;  %s498_s30 = sshll.u32 %s725_s16, 3 }
  0x14   : > { %s497_s29 = sshll.u32 %s819_s28, 3  ;;  %s194_s6 = scalar_lea.hbm %s914_s0, %s498_s30 }
  0x15   : > { %s188_s7 = scalar_lea.vmem [#allocation2], %s497_s29  ;;  %s196_s9 = sshll.u32 %s194_s6, 4  ;;  %s197_s9 = int_to_ptr.hbm [resolvable:$true] %s196_s9 }
  0x16   : > { %s198_s8 = sshll.u32 %s188_s7, 4  ;;  %p828_p0 = pnand %p529_p13, %p795_p4  ;;  %s199_s8 = int_to_ptr.vmem [resolvable:$true] %s198_s8 }
  0x17   : > { %p502_p1 = scmp.ge.s32.totalorder %s729_s17, 1  ;;  %p237_p2 = scmp.lt.s32.totalorder %s729_s17, 3 }
  0x18   : > { %s185_s11 = scalar_lea.sflag [#allocation3], %s819_s28  ;;  %s499_s18 = sshll.u32 %s819_s28, 5 }
  0x19   : > { %521 = dma.hbm_to_vmem [thread:$0]  (!%p828_p0), %s197_s9, 128, %s199_s8, %s185_s11  }
  0x1a   : > { %p238_p3 = pnand %p502_p1, %p237_p2  ;;  %s511_s19 = sshll.u32 %s725_s16, 5 }
  0x1b   : > { %s217_s29 = scalar_lea.hbm %s915_s1, %s511_s19  ;;  %s209_s30 = scalar_lea.vmem [#allocation5], %s499_s18 }
  0x1c   : > { %s220_s22 = sshll.u32 %s209_s30, 4  ;;  %s218_s4 = sshll.u32 %s217_s29, 4  ;;  %s221_s22 = int_to_ptr.vmem [resolvable:$true] %s220_s22  ;;  %s219_s4 = int_to_ptr.hbm [resolvable:$true] %s218_s4 }
  0x1d   : > { %s206_s5 = scalar_lea.sflag [#allocation6], %s819_s28  ;;  %s731_s6 = smov 128  }
  0x1e   : > { %s732_s7 = smov 8   ;;  %241 = sbr.rel (%p238_p3) target bundleno = 188 (0xbc), region = 32 }
  0x1f   : > { %524 = dma.hbm_to_vmem [thread:$0]  (!%p828_p0), %s219_s4, 512, %s221_s22, %s206_s5, %s731_s6, %s731_s6, %s732_s7  }
  0x20   : > { %s846_s8 = sand.u32 (!%p238_p3), 1, %s713_s13  }
  0x21   : > { %s503_s9 = sshll.u32 (!%p238_p3), %s846_s8, 3  ;;  %s244_s11 = scalar_lea.sflag (!%p238_p3), [#allocation3], %s846_s8 }
  0x22   : > { %s247_s19 = scalar_lea.vmem (!%p238_p3), [#allocation2], %s503_s9 }
  0x23   : > { %696 = dma.done.wait (%p801_p8), %s244_s11, 128  }
  0x24   : > { %698 = vsyncadd (%p801_p8), %s244_s11, 4294967168  ;;  %s504_s28 = sshll.u32 %s846_s8, 5  ;;  %s254_s10 = scalar_lea.sflag [#allocation6], %s846_s8 }
  0x25   : > { %s257_s18 = scalar_lea.vmem [#allocation5], %s504_s28 }
  0x26   : > { %700 = dma.done.wait (%p801_p8), %s254_s10, 512  }
  0x27   : > { %702 = vsyncadd (%p801_p8), %s254_s10, 4294966784  ;;  %vm303_vm0 = vcmask 523264   ;;  %s860_s21 = scalar_lea.vmem [#allocation7], %s503_s9  ;;  %v733_v0 = vmov 0.0   ;;  %v310_v1 = vld [vmem:[%s257_s18 + $0x18] sm:$0xff]  ;;  %v309_v2 = vld [vmem:[%s257_s18 + $0x10] sm:$0xff] }
  0x28   : > { %304 = vst.msk [vmem:[%s860_s21] sm:$0xff] %vm303_vm0, %v733_v0  ;;  %327 = vmatpush.msra.mxu0 %v310_v1  ;;  %v308_v3 = vld [vmem:[%s257_s18 + $0x8] sm:$0xff]  ;;  %v307_v4 = vld [vmem:[%s257_s18] sm:$0xff]  ;;  %v306_v5 = vld [vmem:[%s247_s19] sm:$0xff]  ;;  %vm311_vm1 = vcmask 261120   ;;  %p293_p4 = scmp.lt.s32.totalorder %s721_s15, 1 }
  0x29   : > { %s508_s22 = sshll.u32 %s721_s15, 3  ;;  %s363_s7 = sshll.u32 %s860_s21, 4  ;;  %s364_s7 = int_to_ptr.vmem [resolvable:$true] %s363_s7 }
  0x2a   : > { %328 = vmatpush.msra.mxu0 %v309_v2  ;;  %s294_s24 = scalar_select %p293_p4, %s721_s15, 1 }
  0x2b   : > { %s361_s6 = scalar_lea.hbm %s917_s3, %s508_s22  ;;  %s349_s11 = scalar_lea.sflag [#allocation4], %s846_s8 }
  0x2c   : > { %329 = vmatpush.msra.mxu0 %v308_v3  ;;  %s298_s30 = scalar_lea.vmem %s916_s2, %s294_s24  ;;  %s365_s9 = sshll.u32 %s361_s6, 4  ;;  %s366_s9 = int_to_ptr.hbm [resolvable:$true] %s365_s9 }
  0x2d   : > { %v582_v9 = vld [vmem:[%s298_s30] ss:$0 sm:$0xff]  ;;  %s657_s19 = sshra.s32 %s366_s9, 4  ;;  %s663_s18 = scalar_lea.hbm %s917_s3, 16  ;;  %s658_s19 = int_to_ptr.hbm [resolvable:$true] %s657_s19 }
  0x2e   : > { %330 = vmatpush.msra.mxu0 %v307_v4  ;;  %s659_s15 = scalar_lea.hbm %s658_s19, 8  ;;  %p664_p8 = scmp.lt.s32.totalorder %s658_s19, %s917_s3 }
  0x2f   : > { %506 = vmatmul.msk.f32.vlgmr.msra.gmra.mxu0 %vm311_vm1, %v306_v5  ;;  %v305_v6 = vld [vmem:[%s860_s21] sm:$0xff]  ;;  %p660_p5 = scmp.ne.s32.totalorder %s658_s19, %s659_s15  ;;  %p665_p10 = scmp.lt.s32.totalorder %s663_s18, %s659_s15 }
  0x31   : > { %p661_p6 = pnand %p660_p5, %p805_p9  ;;  %p666_p13 = por %p665_p10, %p664_p8 }
  0x33   : > { %p662_p7 = pneg %p661_p6 }
  0x35   : > { %p667_p0 = pnand %p666_p13, %p662_p7 }
  0xac   : > { %v332_v7 = vpop.f32.mrf.mxu0 }
  0xad   : > { %v335_v8 = vadd.f32 %v332_v7, %v305_v6 }
  0xaf   : > { %337 = vst.msk [vmem:[%s860_s21] sm:$0xff] %vm303_vm0, %v335_v8 }
  0xb6   : > { %v341_v10 = vld [vmem:[%s860_s21] sm:$0xff] }
  0xb7   : > { %v346_v11 = vadd.f32 %v582_v9, %v341_v10 }
  0xb9   : > { %347 = vst.msk [vmem:[%s860_s21] sm:$0xff] %vm303_vm0, %v346_v11 }
  0xba   : > { %670 = shalt.err (!%p667_p0)
}
  0xbb   : > { %516 = dma.vmem_to_hbm [thread:$0]  (%p805_p9), %s364_s7, 128, %s366_s9, %s349_s11  }
  0xbc PF: > { %s377_s8 = sand.u32 1, %s709_s12   ;;  %p526_p1 = pnand %p496_p12, %p812_p11 }
  0xbd   : > { %s378_s21 = scalar_lea.sflag [#allocation4], %s377_s8 }
  0xbe   : > { %p527_p2 = pneg %p526_p1 }
  0xc0   : > { %704 = dma.done.wait (%p527_p2), %s378_s21, 128  }
  0xc1   : > { %706 = vsyncadd (%p527_p2), %s378_s21, 4294967168  ;;  %s22_s17 = sadd.s32 1, %s729_s17   ;;  %s923_s12 = smov %s713_s13 }
  0xc2   : > { %p19_p3 = scmp.ge.s32.totalorder %s22_s17, 4   ;;  %s924_s13 = smov %s717_s14 }
  0xc3   : > { %s925_s14 = smov %s810_s26  ;;  %s926_s15 = smov %s725_s16 }
  0xc4   : > { %s927_s16 = smov %s929_s20  ;;  %21 = sbr.rel (!%p19_p3) target bundleno = 8 (0x8), region = 101 }
  0xc9   :  { %384 = vsyncpa [#allocation3], 1 }
  0xca   :  { %386 = vsyncpa [#allocation3 + $0x1], 1 }
  0xcb   :  { %387 = vsyncpa [#allocation6], 1 }
  0xcc   :  { %389 = vsyncpa [#allocation6 + $0x1], 1 }
  0xcd   :  { %390 = vsyncpa [#allocation4], 1 }
  0xce   :  { %392 = vsyncpa [#allocation4 + $0x1], 1 }

</bundles_post_ra>
